<compile_context>
chip_gen: v5e
topology: v5e:2x2
jax: 0.10.0
libtpu: 0.0.40
codegen_flags: <defaults>
</compile_context>

<pallas_src>
import math

import jax
import jax.numpy as jnp
from jax import lax
from jax.experimental import pallas as pl
from jax.experimental.pallas import tpu as pltpu

_LANES = 128
_SUBLANES = 8
_TARGET_BLOCK_BYTES = 4 * 1024 * 1024   # ~4 MiB per array per block
_VMEM_LIMIT_BYTES = 48 * 1024 * 1024    # headroom for 32-bit hash temps

_MANTISSA_BITS = {
    jnp.dtype(jnp.float32): 23,
    jnp.dtype(jnp.float16): 10,
    jnp.dtype(jnp.bfloat16): 7,
}


def _mix32(x):
    """lowbias32 mixer (Wellons) on uint32 values; pure VPU integer ops."""
    x = x ^ (x >> 16)
    x = x * jnp.uint32(0x7FEB352D)
    x = x ^ (x >> 15)
    x = x * jnp.uint32(0x846CA68B)
    x = x ^ (x >> 16)
    return x


def _mix32_py(x):
    """Same mixer on Python ints (host-side seed hashing)."""
    x &= 0xFFFFFFFF
    x ^= x >> 16
    x = (x * 0x7FEB352D) & 0xFFFFFFFF
    x ^= x >> 15
    x = (x * 0x846CA68B) & 0xFFFFFFFF
    x ^= x >> 16
    return x


def _block_uniform(seed_ref, shape, mantissa_bits):
    """Uniform [0,1) f32 tile from hashed global element indices."""
    tr, lanes = shape
    base = pl.program_id(0) * (tr * lanes)                      # int32 scalar
    row = lax.broadcasted_iota(jnp.int32, shape, 0)
    col = lax.broadcasted_iota(jnp.int32, shape, 1)
    idx = lax.bitcast_convert_type(base + row * lanes + col, jnp.uint32)
    seed_u = lax.bitcast_convert_type(seed_ref[0], jnp.uint32)  # pre-mixed
    bits = _mix32(idx + seed_u)
    # Keep only as many mantissa bits as the target dtype holds -> the
    # downcast is exact and the result stays strictly below 1.0.
    mant_mask = ((1 << mantissa_bits) - 1) << (23 - mantissa_bits)
    fbits = (bits & jnp.uint32(mant_mask)) | jnp.uint32(0x3F800000)  # [1,2)
    return lax.bitcast_convert_type(fbits, jnp.float32) - 1.0        # [0,1)


def _make_rand_kernel(mantissa_bits):
    # Write-only kernel: no tensor inputs, a single HBM write pass.
    def kernel(seed_ref, o_ref):
        u = _block_uniform(seed_ref, o_ref.shape, mantissa_bits)
        o_ref[...] = u.astype(o_ref.dtype)
    return kernel


def _make_rand_propagate_kernel(mantissa_bits):
    # Exact `0 * x + threshs`: keeps NaN/Inf propagation from x.
    def kernel(seed_ref, x_ref, o_ref):
        u = _block_uniform(seed_ref, o_ref.shape, mantissa_bits)
        zero = jnp.zeros((), dtype=x_ref.dtype)
        o_ref[...] = x_ref[...] * zero + u.astype(o_ref.dtype)
    return kernel


def _pick_row_tile(rows, itemsize):
    """Row tile: ~4 MiB blocks, 8-sublane granule, grid >= 2 and balanced."""
    if rows <= _SUBLANES:
        return rows  # single block == full array (allowed block shape)
    target_rows = max(
        _SUBLANES,
        (_TARGET_BLOCK_BYTES // (_LANES * itemsize)) // _SUBLANES * _SUBLANES,
    )
    nblocks = max(2, -(-rows // target_rows))      # >=2 for megacore
    tr = -(-rows // nblocks)                       # balanced split
    return -(-tr // _SUBLANES) * _SUBLANES         # round up to sublanes


def random_mask(x, *, seed=0, propagate_nonfinite=False):
    """JAX/Pallas equivalent of RandomMask.forward.

    Returns uniform [0,1) random values with x's shape/dtype (== torch.rand_like(x);
    `0 * x + threshs` for finite x).  With propagate_nonfinite=True the x read is
    kept so NaN/Inf in x propagate exactly like the PyTorch forward.
    """
    orig_shape = x.shape
    dtype = x.dtype
    total = int(math.prod(orig_shape))
    rows = -(-total // _LANES)                     # ceil(total / 128)
    itemsize = max(jnp.dtype(dtype).itemsize, 4)   # 32-bit hash temps
    tr = _pick_row_tile(rows, itemsize)
    grid = (-(-rows // tr),)                       # partial last block OK
    mantissa_bits = _MANTISSA_BITS.get(jnp.dtype(dtype), 23)

    # Hash the seed on the host; kernel adds it to the global element counter.
    mixed = _mix32_py(int(seed))
    if mixed >= (1 << 31):
        mixed -= 1 << 32
    seed_arr = jnp.asarray([mixed], dtype=jnp.int32)

    compiler_params = pltpu.CompilerParams(
        dimension_semantics=("parallel",),
        vmem_limit_bytes=_VMEM_LIMIT_BYTES,
    )
    out_spec = pl.BlockSpec((tr, _LANES), lambda i, seed: (i, 0))
    out_shape = jax.ShapeDtypeStruct((rows, _LANES), dtype)

    if not propagate_nonfinite:
        out2 = pl.pallas_call(
            _make_rand_kernel(mantissa_bits),
            out_shape=out_shape,
            grid_spec=pltpu.PrefetchScalarGridSpec(
                num_scalar_prefetch=1,
                grid=grid,
                in_specs=[],
                out_specs=out_spec,
            ),
            compiler_params=compiler_params,
        )(seed_arr)
    else:
        padded_total = rows * _LANES
        x_flat = x.reshape(-1)
        if padded_total != total:
            x_flat = jnp.pad(x_flat, (0, padded_total - total))
        x2 = x_flat.reshape(rows, _LANES)
        out2 = pl.pallas_call(
            _make_rand_propagate_kernel(mantissa_bits),
            out_shape=out_shape,
            grid_spec=pltpu.PrefetchScalarGridSpec(
                num_scalar_prefetch=1,
                grid=grid,
                in_specs=[pl.BlockSpec((tr, _LANES), lambda i, seed: (i, 0))],
                out_specs=out_spec,
            ),
            compiler_params=compiler_params,
        )(seed_arr, x2)

    out = out2.reshape(-1)
    if rows * _LANES != total:     # only when total % 128 != 0
        out = out[:total]
    return out.reshape(orig_shape)


if __name__ == "__main__":
    key = jax.random.PRNGKey(0)
    shape = (2, 4, 16, 16)  # NCHW, consistent with the mask layer
    x = jax.random.normal(key, shape, dtype=jnp.float32)

    out = jax.block_until_ready(random_mask(x, seed=0))

    # Shape / dtype / distribution checks (output is random by construction).
    assert out.shape == shape
    assert out.dtype == x.dtype
    assert bool(jnp.all(jnp.isfinite(out)))
    assert bool(jnp.all(out >= 0.0)) and bool(jnp.all(out < 1.0))
    mean = float(jnp.mean(out))
    std = float(jnp.std(out))
    assert 0.40 < mean < 0.60, f"mean {mean} not ~0.5"
    assert std > 0.1, f"std {std} too small for uniform [0,1)"

    # Deterministic per seed; different seeds give different masks.
    out_again = jax.block_until_ready(random_mask(x, seed=0))
    assert bool(jnp.all(out == out_again))
    out_other = jax.block_until_ready(random_mask(x, seed=1))
    assert not bool(jnp.all(out == out_other))

    # Optional exact-semantics path: 0 * x + threshs propagates NaN.
    nan_mask = jnp.zeros(shape, bool).at[0, 0, 0, 0].set(True)
    x_nan = jnp.where(nan_mask, jnp.nan, x)
    out_p = jax.block_until_ready(
        random_mask(x_nan, seed=0, propagate_nonfinite=True))
    assert bool(jnp.isnan(out_p[0, 0, 0, 0]))
    assert bool(jnp.all(jnp.where(nan_mask, True, out_p == out)))

    print("KERNEL_OK")
</pallas_src>

<mosaic_0001>
module attributes {stable_mosaic.version = 11 : i64} {
  func.func @kernel(%arg0: i32, %arg1: memref<1xi32, #tpu.memory_space<smem>>, %arg2: memref<8x128xf32, #tpu.memory_space<vmem>>) attributes {dimension_semantics = [#tpu.dimension_semantics<parallel>], iteration_bounds = array<i64: 2>, scalar_prefetch = 1 : i64, scratch_operands = 0 : i64, tpu.core_type = #tpu.core_type<tc>, window_params = [{transform_indices = @transform_0, window_bounds = array<i64: 8, 128>}]} {
    %c1024_i32 = arith.constant 1024 : i32
    %0 = arith.muli %arg0, %c1024_i32 : i32
    %1 = tpu.iota {dimensions = array<i32: 0>} : vector<8x128xi32>
    %2 = tpu.iota {dimensions = array<i32: 1>} : vector<8x128xi32>
    %c128_i32 = arith.constant 128 : i32
    %3 = vector.broadcast %c128_i32 : i32 to vector<8x128xi32>
    %4 = arith.muli %1, %3 : vector<8x128xi32>
    %5 = vector.broadcast %0 : i32 to vector<8x128xi32>
    %6 = arith.addi %5, %4 : vector<8x128xi32>
    %7 = arith.addi %6, %2 : vector<8x128xi32>
    %8 = tpu.bitcast %7 : vector<8x128xi32> -> vector<8x128xi32>
    %c0 = arith.constant 0 : index
    %9 = memref.load %arg1[%c0] : memref<1xi32, #tpu.memory_space<smem>>
    %10 = arith.bitcast %9 : i32 to i32
    %11 = vector.broadcast %10 : i32 to vector<8x128xi32>
    %12 = arith.addi %8, %11 : vector<8x128xi32>
    %c16_i32 = arith.constant 16 : i32
    %13 = vector.broadcast %c16_i32 : i32 to vector<8x128xi32>
    %14 = arith.shrui %12, %13 : vector<8x128xi32>
    %15 = arith.xori %12, %14 : vector<8x128xi32>
    %c2146121005_i32 = arith.constant 2146121005 : i32
    %16 = vector.broadcast %c2146121005_i32 : i32 to vector<8x128xi32>
    %17 = arith.muli %15, %16 : vector<8x128xi32>
    %c15_i32 = arith.constant 15 : i32
    %18 = vector.broadcast %c15_i32 : i32 to vector<8x128xi32>
    %19 = arith.shrui %17, %18 : vector<8x128xi32>
    %20 = arith.xori %17, %19 : vector<8x128xi32>
    %c-2073254261_i32 = arith.constant -2073254261 : i32
    %21 = vector.broadcast %c-2073254261_i32 : i32 to vector<8x128xi32>
    %22 = arith.muli %20, %21 : vector<8x128xi32>
    %c16_i32_0 = arith.constant 16 : i32
    %23 = vector.broadcast %c16_i32_0 : i32 to vector<8x128xi32>
    %24 = arith.shrui %22, %23 : vector<8x128xi32>
    %25 = arith.xori %22, %24 : vector<8x128xi32>
    %c8388607_i32 = arith.constant 8388607 : i32
    %26 = vector.broadcast %c8388607_i32 : i32 to vector<8x128xi32>
    %27 = arith.andi %25, %26 : vector<8x128xi32>
    %c1065353216_i32 = arith.constant 1065353216 : i32
    %28 = vector.broadcast %c1065353216_i32 : i32 to vector<8x128xi32>
    %29 = arith.ori %27, %28 : vector<8x128xi32>
    %30 = tpu.bitcast %29 : vector<8x128xi32> -> vector<8x128xf32>
    %cst = arith.constant 1.000000e+00 : f32
    %31 = vector.broadcast %cst : f32 to vector<8x128xf32>
    %32 = arith.subf %30, %31 : vector<8x128xf32>
    %c0_1 = arith.constant 0 : index
    %c0_2 = arith.constant 0 : index
    %33 = vector.load %arg2[%c0_1, %c0_2] : memref<8x128xf32, #tpu.memory_space<vmem>>, vector<8x128xf32>
    tpu.vector_store %arg2[%c0_1, %c0_2], %32 {strides = array<i32>} : memref<8x128xf32, #tpu.memory_space<vmem>>, vector<8x128xf32>,
    return
  }
  func.func @transform_0(%arg0: i32, %arg1: memref<1xi32, #tpu.memory_space<smem>>) -> (i32, i32) {
    %c0_i32 = arith.constant 0 : i32
    %c0_i32_0 = arith.constant 0 : i32
    return %arg0, %c0_i32 : i32, i32
  }
}

</mosaic_0001>

<bundles_post_ra>
// kernel: tpu_custom_call.1
= control target key start
LH: loop header
LB: loop body
LE: loop exit
PB: predicated region body
PF: predicated region fallthrough
CT: control target
= control target key end

     0   :  { %s309_s0 = inlined_call_operand.<no memory space> [shape: s32[1], index: 0, kind: input, shape index: {}]   ;;  %s310_s1 = inlined_call_operand.hbm [shape: f32[16,128], index: 1, kind: output, shape index: {}]  }
   0x1   :  { %6 = sst [smem:[#allocation3]] %s309_s0 }
   0x2   :  { %7 = vsyncpa [#allocation5], 0 }
   0x3   :  { %9 = vsyncpa [#allocation5 + $0x1], 0  ;;  %s242_s8 = smov 0   ;;  %s244_s9 = smov 0  }
   0x4   :  { %s246_s10 = smov 0  }
   0x5 LB: > { %s132_s0 = sadd.s32 4294967295, %s227_s10   ;;  %s259_s11 = sadd.s32 1, %s227_s10   ;;  %s227_s10 = sphi %s246_s10, %s315_s10   ;;  %s223_s9 = sphi %s244_s9, %s314_s9   ;;  %s219_s8 = sphi %s242_s8, %s313_s8  }
   0x6   : > { %s18_s12 = ssub.s32 %s227_s10, %s259_s11  ;;  %s21_s13 = sadd.s32 1, %s223_s9 }
   0x7   : > { %p19_p0 = scmp.eq.s32.totalorder %s18_s12, 0  ;;  %p133_p1 = scmp.ne.s32.totalorder %s18_s12, 0 }
   0x8   : > { %p25_p2 = scmp.eq.s32.totalorder %s227_s10, 1  ;;  %p30_p3 = scmp.ne.s32.totalorder %s223_s9, %s219_s8 }
   0x9   : > { %s268_s14 = scalar_select %p19_p0, %s223_s9, %s21_s13  }
   0xa   : > { %p270_p4 = por %p133_p1, %p25_p2  ;;  %p31_p5 = scmp.eq.s32.totalorder %s132_s0, 1 }
   0xb   : > { %p134_p7 = scmp.ge.s32.totalorder %s227_s10, 2 }
   0xc   : > { %p274_p6 = por %p31_p5, %p30_p3  ;;  %s136_s17 = sshll.u32 (!%p134_p7), %s227_s10, 10 }
   0xd   : > { %40 = sbr.rel (%p134_p7) target bundleno = 55 (0x37), region = 12  ;;  %s57_s18 = sld [smem:[#allocation3]] (!%p134_p7) }
   0xe   : > { %s45_s19 = sand.u32 (!%p134_p7), 1, %s223_s9   ;;  %s139_s21 = sshll.u32 (!%p134_p7), %s227_s10, 3 }
   0xf   : > { %s135_s20 = sshll.u32 (!%p134_p7), %s45_s19, 3  ;;  %s84_s24 = scalar_lea.hbm (!%p134_p7), %s310_s1, %s139_s21 }
  0x10   : > { %s47_s25 = scalar_lea.vmem (!%p134_p7), [#allocation4], %s135_s20  ;;  %s88_s27 = sshll.u32 (!%p134_p7), %s84_s24, 4  ;;  %s89_s27 = int_to_ptr.hbm [resolvable:$true] %s88_s27 }
  0x11   : > { %s86_s26 = sshll.u32 (!%p134_p7), %s47_s25, 4  ;;  %s74_s28 = scalar_lea.sflag (!%p134_p7), [#allocation5], %s45_s19  ;;  %s87_s26 = int_to_ptr.vmem [resolvable:$true] %s86_s26 }
  0x12   : > { %v49_v0 = vlaneseq  ;;  %v54_v2 = vstv %s136_s17  ;;  %s187_s29 = sshra.s32 %s89_s27, 4  ;;  %s193_s4 = scalar_lea.hbm %s310_s1, 16  ;;  %s188_s29 = int_to_ptr.hbm [resolvable:$true] %s187_s29 }
  0x13   : > { %v58_v6 = vstv %s57_s18  ;;  %s189_s30 = scalar_lea.hbm %s188_s29, 8  ;;  %p194_p11 = scmp.lt.s32.totalorder %s188_s29, %s310_s1 }
  0x14   : > { %v50_v1 = vshrl.u32 %v49_v0, 7  ;;  %v52_v3 = vand.u32 127, %v49_v0  ;;  %p190_p8 = scmp.ne.s32.totalorder %s188_s29, %s189_s30  ;;  %p195_p12 = scmp.lt.s32.totalorder %s193_s4, %s189_s30 }
  0x16   : > { %v53_v4 = vmul.u32 128, %v50_v1  ;;  %p191_p9 = pnand %p190_p8, %p270_p4  ;;  %p196_p13 = por %p195_p12, %p194_p11 }
  0x18   : > { %v55_v5 = vadd.s32 %v54_v2, %v53_v4  ;;  %p192_p10 = pneg %p191_p9 }
  0x1a   : > { %v56_v7 = vadd.s32 %v55_v5, %v52_v3  ;;  %p197_p0 = pnand %p196_p13, %p192_p10 }
  0x1c   : > { %v59_v8 = vadd.s32 %v58_v6, %v56_v7 }
  0x1e   : > { %v60_v9 = vshrl.u32 %v59_v8, 16 }
  0x20   : > { %v61_v10 = vxor.u32 %v60_v9, %v59_v8 }
  0x22   : > { %v62_v11 = vmul.u32 2146121005, %v61_v10 }
  0x24   : > { %v63_v12 = vshrl.u32 %v62_v11, 15 }
  0x26   : > { %v64_v13 = vxor.u32 %v63_v12, %v62_v11 }
  0x28   : > { %v65_v14 = vmul.u32 2221713035, %v64_v13 }
  0x2a   : > { %v66_v15 = vshrl.u32 %v65_v14, 16 }
  0x2c   : > { %v67_v16 = vxor.u32 %v66_v15, %v65_v14 }
  0x2e   : > { %v68_v17 = vand.u32 8388607, %v67_v16 }
  0x30   : > { %v69_v18 = vor.u32 1065353216, %v68_v17 }
  0x32   : > { %v137_v19 = vadd.f32 -1.0, %v69_v18 }
  0x34   : > { %72 = vst [vmem:[%s47_s25] sm:$0xff] %v137_v19 }
  0x35   : > { %200 = shalt.err (!%p197_p0)
}
  0x36   : > { %142 = dma.vmem_to_hbm [thread:$0]  (%p270_p4), %s87_s26, 128, %s89_s27, %s74_s28  }
  0x37 PF: > { %p148_p1 = scmp.ge.s32.totalorder %s227_s10, 1  ;;  %s100_s7 = sand.u32 1, %s219_s8  }
  0x38   : > { %s101_s0 = scalar_lea.sflag [#allocation5], %s100_s7 }
  0x39   : > { %p145_p2 = pnand %p148_p1, %p274_p6 }
  0x3b   : > { %p146_p3 = pneg %p145_p2 }
  0x3d   : > { %214 = dma.done.wait (%p146_p3), %s101_s0, 128  }
  0x3e   : > { %216 = vsyncadd (%p146_p3), %s101_s0, 4294967168  ;;  %p12_p5 = scmp.ge.s32.totalorder %s259_s11, 3   ;;  %s313_s8 = smov %s223_s9 }
  0x3f   : > { %s314_s9 = smov %s268_s14  ;;  %s315_s10 = smov %s259_s11 }
  0x40   :  { %14 = sbr.rel (!%p12_p5) target bundleno = 5 (0x5), region = 44 }
  0x45   :  { %107 = vsyncpa [#allocation5], 1 }
  0x46   :  { %109 = vsyncpa [#allocation5 + $0x1], 1 }

</bundles_post_ra>
